<compile_context>
chip_gen: v6e
topology: v6e:2x2x1
jax: 0.10.0
libtpu: 0.0.40
codegen_flags: <defaults>
</compile_context>

<pallas_src>
import functools

import jax
import jax.numpy as jnp
from jax.experimental import pallas as pl
from jax.experimental.pallas import tpu as pltpu

INPUT_DIM = 5
HIDDEN_DIM = 64
OUTPUT_DIM = 2

# Padded (hardware-friendly) dims.
IN_PAD = 8      # x rows become contiguous 32-byte transfers (sublane granularity)
HID_PAD = 128   # fc1 N / fc2 K fill the full 128-lane vreg / MXU width
OUT_PAD = 128   # lane-dense output block -> unmasked stores, contiguous writeback


def _round_up(n, m):
    return ((n + m - 1) // m) * m


def mlp_kernel(x_ref, w1_ref, b1_ref, w2_ref, b2_ref, o_ref):
    # fc1 -> ReLU -> fc2, all in f32 on one batch tile.
    x = x_ref[...]
    h = jnp.dot(x, w1_ref[...], preferred_element_type=jnp.float32)
    h = jnp.maximum(h + b1_ref[...], 0.0)          # bias broadcast (1,H), ReLU on VPU
    y = jnp.dot(h, w2_ref[...], preferred_element_type=jnp.float32)
    o_ref[...] = (y + b2_ref[...]).astype(o_ref.dtype)


@functools.partial(jax.jit, static_argnames=("tb",))
def mlp_forward(x, w1, b1, w2, b2, *, tb=256):
    """x: [batch, INPUT_DIM] f32. Weights stored transposed vs. PyTorch:
    w1 [INPUT_DIM, HIDDEN_DIM], b1 [1, HIDDEN_DIM], w2 [HIDDEN_DIM, OUTPUT_DIM],
    b2 [1, OUTPUT_DIM]."""
    batch = x.shape[0]

    # --- feature-dim zero padding (exact: padded entries contribute 0) ---
    x_p = jnp.pad(x, ((0, 0), (0, IN_PAD - INPUT_DIM)))
    w1_p = jnp.pad(w1, ((0, IN_PAD - INPUT_DIM), (0, HID_PAD - HIDDEN_DIM)))
    b1_p = jnp.pad(b1, ((0, 0), (0, HID_PAD - HIDDEN_DIM)))
    w2_p = jnp.pad(w2, ((0, HID_PAD - HIDDEN_DIM), (0, OUT_PAD - OUTPUT_DIM)))
    b2_p = jnp.pad(b2, ((0, 0), (0, OUT_PAD - OUTPUT_DIM)))

    # --- batch tiling: tile of up to `tb` rows, batch padded to a multiple of it ---
    tb_eff = min(tb, _round_up(batch, 8))
    batch_p = _round_up(batch, tb_eff)
    if batch_p != batch:
        x_p = jnp.pad(x_p, ((0, batch_p - batch), (0, 0)))

    grid = (batch_p // tb_eff,)

    out = pl.pallas_call(
        mlp_kernel,
        out_shape=jax.ShapeDtypeStruct((batch_p, OUT_PAD), jnp.float32),
        grid=grid,
        in_specs=[
            # x tile marches along the batch; gets double-buffered by the pipeline.
            pl.BlockSpec((tb_eff, IN_PAD), lambda i: (i, 0)),
            # Weights / biases: constant index_map -> DMA'd once, VMEM-resident.
            pl.BlockSpec((IN_PAD, HID_PAD), lambda i: (0, 0)),
            pl.BlockSpec((1, HID_PAD), lambda i: (0, 0)),
            pl.BlockSpec((HID_PAD, OUT_PAD), lambda i: (0, 0)),
            pl.BlockSpec((1, OUT_PAD), lambda i: (0, 0)),
        ],
        out_specs=pl.BlockSpec((tb_eff, OUT_PAD), lambda i: (i, 0)),
        compiler_params=pltpu.CompilerParams(
            # Batch tiles are independent: lets v7x shard them across its 2 TCs.
            dimension_semantics=("parallel",),
        ),
    )(x_p, w1_p, b1_p, w2_p, b2_p)

    # Strip batch tail padding and the lane padding on the output features.
    return out[:batch, :OUTPUT_DIM]


def init_params(key):
    # Deterministic init mimicking nn.Linear's uniform(-1/sqrt(fan_in), 1/sqrt(fan_in)).
    k1, k2, k3, k4 = jax.random.split(key, 4)
    bound1 = 1.0 / jnp.sqrt(INPUT_DIM)
    bound2 = 1.0 / jnp.sqrt(HIDDEN_DIM)
    # Stored already-transposed relative to PyTorch's [out, in] convention.
    w1 = jax.random.uniform(k1, (INPUT_DIM, HIDDEN_DIM), jnp.float32, -bound1, bound1)
    b1 = jax.random.uniform(k2, (1, HIDDEN_DIM), jnp.float32, -bound1, bound1)
    w2 = jax.random.uniform(k3, (HIDDEN_DIM, OUTPUT_DIM), jnp.float32, -bound2, bound2)
    b2 = jax.random.uniform(k4, (1, OUTPUT_DIM), jnp.float32, -bound2, bound2)
    return w1, b1, w2, b2


def reference_forward(x, w1, b1, w2, b2):
    h = jnp.maximum(x @ w1 + b1, 0.0)
    return h @ w2 + b2


if __name__ == "__main__":
    key = jax.random.PRNGKey(0)
    kx, kp = jax.random.split(key)
    batch = 8
    x = jax.random.normal(kx, (batch, INPUT_DIM), jnp.float32)
    w1, b1, w2, b2 = init_params(kp)

    out = mlp_forward(x, w1, b1, w2, b2)
    out = jax.block_until_ready(out)

    ref = reference_forward(x, w1, b1, w2, b2)
    assert out.shape == (batch, OUTPUT_DIM), out.shape
    assert jnp.allclose(out, ref, atol=1e-5, rtol=1e-5), jnp.max(jnp.abs(out - ref))
    print("KERNEL_OK")
</pallas_src>

<mosaic_0001>
module attributes {stable_mosaic.version = 11 : i64} {
  func.func @mlp_kernel(%arg0: i32, %arg1: memref<8x8xf32, #tpu.memory_space<vmem>>, %arg2: memref<8x128xf32, #tpu.memory_space<vmem>>, %arg3: memref<1x128xf32, #tpu.memory_space<vmem>>, %arg4: memref<128x128xf32, #tpu.memory_space<vmem>>, %arg5: memref<1x128xf32, #tpu.memory_space<vmem>>, %arg6: memref<8x128xf32, #tpu.memory_space<vmem>>) attributes {dimension_semantics = [#tpu.dimension_semantics<parallel>], iteration_bounds = array<i64: 1>, scalar_prefetch = 0 : i64, scratch_operands = 0 : i64, tpu.core_type = #tpu.core_type<tc>, window_params = [{transform_indices = @transform_0, window_bounds = array<i64: 8, 8>}, {pipeline_mode = #tpu.pipeline_mode<synchronous>, transform_indices = @transform_1, window_bounds = array<i64: 8, 128>}, {pipeline_mode = #tpu.pipeline_mode<synchronous>, transform_indices = @transform_2, window_bounds = array<i64: 1, 128>}, {pipeline_mode = #tpu.pipeline_mode<synchronous>, transform_indices = @transform_3, window_bounds = array<i64: 128, 128>}, {pipeline_mode = #tpu.pipeline_mode<synchronous>, transform_indices = @transform_4, window_bounds = array<i64: 1, 128>}, {transform_indices = @transform_5, window_bounds = array<i64: 8, 128>}]} {
    %c0 = arith.constant 0 : index
    %c0_0 = arith.constant 0 : index
    %0 = vector.load %arg1[%c0, %c0_0] : memref<8x8xf32, #tpu.memory_space<vmem>>, vector<8x8xf32>
    %c0_1 = arith.constant 0 : index
    %c0_2 = arith.constant 0 : index
    %1 = vector.load %arg2[%c0_1, %c0_2] : memref<8x128xf32, #tpu.memory_space<vmem>>, vector<8x128xf32>
    %cst = arith.constant dense<0.000000e+00> : vector<8x128xf32>
    %2 = tpu.matmul %0, %1, %cst {dimension_numbers = #tpu.dot_dimension_numbers<[1], [0], [0], [1], [0, 0, 1, 1], [], []>} : vector<8x8xf32>, vector<8x128xf32>, vector<8x128xf32> -> vector<8x128xf32>
    %c0_3 = arith.constant 0 : index
    %c0_4 = arith.constant 0 : index
    %3 = vector.load %arg3[%c0_3, %c0_4] : memref<1x128xf32, #tpu.memory_space<vmem>>, vector<1x128xf32>
    %4 = vector.broadcast %3 : vector<1x128xf32> to vector<8x128xf32>
    %5 = arith.addf %2, %4 : vector<8x128xf32>
    %cst_5 = arith.constant 0.000000e+00 : f32
    %6 = vector.broadcast %cst_5 : f32 to vector<8x128xf32>
    %7 = arith.maximumf %5, %6 : vector<8x128xf32>
    %c0_6 = arith.constant 0 : index
    %c0_7 = arith.constant 0 : index
    %8 = vector.load %arg4[%c0_6, %c0_7] : memref<128x128xf32, #tpu.memory_space<vmem>>, vector<128x128xf32>
    %cst_8 = arith.constant dense<0.000000e+00> : vector<8x128xf32>
    %9 = tpu.matmul %7, %8, %cst_8 {dimension_numbers = #tpu.dot_dimension_numbers<[1], [0], [0], [1], [0, 0, 1, 1], [], []>} : vector<8x128xf32>, vector<128x128xf32>, vector<8x128xf32> -> vector<8x128xf32>
    %c0_9 = arith.constant 0 : index
    %c0_10 = arith.constant 0 : index
    %10 = vector.load %arg5[%c0_9, %c0_10] : memref<1x128xf32, #tpu.memory_space<vmem>>, vector<1x128xf32>
    %11 = vector.broadcast %10 : vector<1x128xf32> to vector<8x128xf32>
    %12 = arith.addf %9, %11 : vector<8x128xf32>
    %c0_11 = arith.constant 0 : index
    %c0_12 = arith.constant 0 : index
    %13 = vector.load %arg6[%c0_11, %c0_12] : memref<8x128xf32, #tpu.memory_space<vmem>>, vector<8x128xf32>
    tpu.vector_store %arg6[%c0_11, %c0_12], %12 {strides = array<i32>} : memref<8x128xf32, #tpu.memory_space<vmem>>, vector<8x128xf32>,
    return
  }
  func.func @transform_0(%arg0: i32) -> (i32, i32) {
    %c0_i32 = arith.constant 0 : i32
    %c0_i32_0 = arith.constant 0 : i32
    return %arg0, %c0_i32 : i32, i32
  }
  func.func @transform_1(%arg0: i32) -> (i32, i32) {
    %c0_i32 = arith.constant 0 : i32
    %c0_i32_0 = arith.constant 0 : i32
    %c0_i32_1 = arith.constant 0 : i32
    return %c0_i32, %c0_i32_0 : i32, i32
  }
  func.func @transform_2(%arg0: i32) -> (i32, i32) {
    %c0_i32 = arith.constant 0 : i32
    %c0_i32_0 = arith.constant 0 : i32
    %c0_i32_1 = arith.constant 0 : i32
    return %c0_i32, %c0_i32_0 : i32, i32
  }
  func.func @transform_3(%arg0: i32) -> (i32, i32) {
    %c0_i32 = arith.constant 0 : i32
    %c0_i32_0 = arith.constant 0 : i32
    %c0_i32_1 = arith.constant 0 : i32
    return %c0_i32, %c0_i32_0 : i32, i32
  }
  func.func @transform_4(%arg0: i32) -> (i32, i32) {
    %c0_i32 = arith.constant 0 : i32
    %c0_i32_0 = arith.constant 0 : i32
    %c0_i32_1 = arith.constant 0 : i32
    return %c0_i32, %c0_i32_0 : i32, i32
  }
  func.func @transform_5(%arg0: i32) -> (i32, i32) {
    %c0_i32 = arith.constant 0 : i32
    %c0_i32_0 = arith.constant 0 : i32
    return %arg0, %c0_i32 : i32, i32
  }
}

</mosaic_0001>

<bundles_post_ra>
// kernel: mlp_forward.1
= control target key start
LH: loop header
LB: loop body
LE: loop exit
PB: predicated region body
PF: predicated region fallthrough
CT: control target
= control target key end

     0   :  { %vm29_vm0 = vcmask 64512   ;;  %v266_v0 = vmov 0.0   ;;  %vm267_vm1 = vmmov 0   ;;  %s361_s1 = inlined_call_operand.vmem [shape: f32[8,128], index: 1, kind: input, shape index: {}]   ;;  %s362_s0 = inlined_call_operand.vmem [shape: f32[8,8], index: 0, kind: input, shape index: {}]   ;;  %s363_s3 = inlined_call_operand.vmem [shape: f32[128,128], index: 3, kind: input, shape index: {}]   ;;  %s364_s2 = inlined_call_operand.vmem [shape: f32[1,128], index: 2, kind: input, shape index: {}]   ;;  %s365_s4 = inlined_call_operand.vmem [shape: f32[1,128], index: 4, kind: input, shape index: {}]   ;;  %s366_s5 = inlined_call_operand.vmem [shape: f32[8,128], index: 5, kind: output, shape index: {}]  }
   0x1   :  { %224 = vmatprep.subr.mxu0 %v266_v0  ;;  %v21_v1 = vld [vmem:[%s361_s1] sm:$0xff]  ;;  %226 = vmatprep.mubr.msk.f32.mxu0 %vm267_vm1, %v266_v0  ;;  %v119_v3 = vld [vmem:[%s363_s3 + $0x78] sm:$0xff]  ;;  %v118_v4 = vld [vmem:[%s363_s3 + $0x70] sm:$0xff] }
   0x2   :  { %v20_v2 = vld [vmem:[%s362_s0] sm:$0xff]  ;;  %225 = vmatpush3.msra.mxu0 %v21_v1  ;;  %229 = vmatprep.subr.mxu1 %v266_v0  ;;  %v117_v5 = vld [vmem:[%s363_s3 + $0x68] sm:$0xff]  ;;  %v115_v7 = vld [vmem:[%s363_s3 + $0x58] sm:$0xff] }
   0x3   :  { %227 = vmatmul.mubr.msk.f32.vlgmr.msra.gmra.mxu0 %vm29_vm0, %v20_v2  ;;  %230 = vmatpush3.msra.mxu1 %v119_v3  ;;  %v116_v6 = vld [vmem:[%s363_s3 + $0x60] sm:$0xff]  ;;  %v114_v8 = vld [vmem:[%s363_s3 + $0x50] sm:$0xff]  ;;  %v113_v9 = vld [vmem:[%s363_s3 + $0x48] sm:$0xff] }
   0x4   :  { %231 = vmatprep.subr.mxu1 %v266_v0  ;;  %261 = vmatprep.mubr.msk.f32.mxu1 %vm267_vm1, %v266_v0  ;;  %v112_v10 = vld [vmem:[%s363_s3 + $0x40] sm:$0xff]  ;;  %v111_v11 = vld [vmem:[%s363_s3 + $0x38] sm:$0xff]  ;;  %v110_v12 = vld [vmem:[%s363_s3 + $0x30] sm:$0xff] }
   0x5   :  { %232 = vmatpush3.msra.mxu1 %v118_v4  ;;  %v109_v13 = vld [vmem:[%s363_s3 + $0x28] sm:$0xff]  ;;  %v108_v14 = vld [vmem:[%s363_s3 + $0x20] sm:$0xff]  ;;  %v107_v15 = vld [vmem:[%s363_s3 + $0x18] sm:$0xff] }
   0x6   :  { %233 = vmatprep.subr.mxu1 %v266_v0  ;;  %v106_v16 = vld [vmem:[%s363_s3 + $0x10] sm:$0xff]  ;;  %v105_v17 = vld [vmem:[%s363_s3 + $0x8] sm:$0xff]  ;;  %v104_v18 = vld [vmem:[%s363_s3] sm:$0xff] }
   0x7   :  { %234 = vmatpush3.msra.mxu1 %v117_v5  ;;  %v202_v19 = vld [vmem:[%s364_s2] ss:$0 sm:$0xff] }
   0x8   :  { %235 = vmatprep.subr.mxu1 %v266_v0  ;;  %v204_v24 = vld [vmem:[%s365_s4] ss:$0 sm:$0xff] }
   0x9   :  { %236 = vmatpush3.msra.mxu1 %v116_v6 }
   0xa   :  { %237 = vmatprep.subr.mxu1 %v266_v0 }
   0xb   :  { %238 = vmatpush3.msra.mxu1 %v115_v7 }
   0xc   :  { %239 = vmatprep.subr.mxu1 %v266_v0 }
   0xd   :  { %240 = vmatpush3.msra.mxu1 %v114_v8 }
   0xe   :  { %241 = vmatprep.subr.mxu1 %v266_v0 }
   0xf   :  { %242 = vmatpush3.msra.mxu1 %v113_v9 }
  0x10   :  { %243 = vmatprep.subr.mxu1 %v266_v0 }
  0x11   :  { %244 = vmatpush3.msra.mxu1 %v112_v10 }
  0x12   :  { %245 = vmatprep.subr.mxu1 %v266_v0 }
  0x13   :  { %246 = vmatpush3.msra.mxu1 %v111_v11 }
  0x14   :  { %247 = vmatprep.subr.mxu1 %v266_v0 }
  0x15   :  { %248 = vmatpush3.msra.mxu1 %v110_v12 }
  0x16   :  { %249 = vmatprep.subr.mxu1 %v266_v0 }
  0x17   :  { %250 = vmatpush3.msra.mxu1 %v109_v13 }
  0x18   :  { %251 = vmatprep.subr.mxu1 %v266_v0 }
  0x19   :  { %252 = vmatpush3.msra.mxu1 %v108_v14 }
  0x1a   :  { %253 = vmatprep.subr.mxu1 %v266_v0 }
  0x1b   :  { %254 = vmatpush3.msra.mxu1 %v107_v15 }
  0x1c   :  { %255 = vmatprep.subr.mxu1 %v266_v0 }
  0x1d   :  { %256 = vmatpush3.msra.mxu1 %v106_v16 }
  0x1e   :  { %257 = vmatprep.subr.mxu1 %v266_v0 }
  0x1f   :  { %258 = vmatpush3.msra.mxu1 %v105_v17 }
  0x20   :  { %259 = vmatprep.subr.mxu1 %v266_v0 }
  0x21   :  { %260 = vmatpush3.msra.mxu1 %v104_v18 }
  0xc3   :  { %v99_v20 = vpop.f32.mrf.mxu0 }
  0xc4   :  { %v100_v21 = vadd.f32 %v202_v19, %v99_v20 }
  0xc5   :  { %v228_v22 = vpop.f32.mrf.mxu0 }
  0xc6   :  { %v103_v23 = vmax.f32 %v100_v21, 0.0 }
  0xc8   :  { %262 = vmatmul.mubr.f32.vlgmr.msra.gmra.mxu1 %v103_v23 }
 0x188   :  { %v193_v25 = vpop.f32.mrf.mxu1 }
 0x189   :  { %v194_v26 = vadd.f32 %v204_v24, %v193_v25 }
 0x18a   :  { %v263_v27 = vpop.f32.mrf.mxu1 }
 0x18b   :  { %197 = vst [vmem:[%s366_s5] sm:$0xff] %v194_v26 }

</bundles_post_ra>
